<compile_context>
chip_gen: v5e
topology: v5e:2x2
jax: 0.10.0
libtpu: 0.0.40
codegen_flags: <defaults>
</compile_context>

<pallas_src>
import functools

import numpy as np
import jax
import jax.numpy as jnp
from jax import lax
from jax.experimental import pallas as pl
from jax.experimental.pallas import tpu as pltpu

SIZES = (1, 3, 6, 8)


def _round_up(a: int, m: int) -> int:
    return ((a + m - 1) // m) * m


def _adaptive_pool_matrix_1d(in_size: int, out_size: int) -> np.ndarray:
    """(in_size, out_size) averaging weights matching nn.AdaptiveAvgPool semantics."""
    m = np.zeros((in_size, out_size), dtype=np.float32)
    for i in range(out_size):
        start = (i * in_size) // out_size
        end = -(-((i + 1) * in_size) // out_size)  # ceil((i+1)*in/out)
        m[start:end, i] = 1.0 / float(end - start)
    return m


def build_pool_matrix(h: int, w: int, sizes=SIZES) -> np.ndarray:
    """(H*W, sum(s*s)) matrix P such that x_flat @ P == concat of pooled+flattened feats."""
    mats = []
    for s in sizes:
        ph = _adaptive_pool_matrix_1d(h, s)  # (H, s)
        pw = _adaptive_pool_matrix_1d(w, s)  # (W, s)
        # P[h*W + w, i*s + j] = ph[h, i] * pw[w, j]
        P = np.einsum("hi,wj->hwij", ph, pw).reshape(h * w, s * s)
        mats.append(P)
    return np.concatenate(mats, axis=1).astype(np.float32)


@functools.lru_cache(maxsize=None)
def _pool_matrix_on_device(h: int, w: int, sizes: tuple):
    """Cache the (K, L) f32 pooling matrix on device per (H, W, sizes)."""
    return jnp.asarray(build_pool_matrix(h, w, sizes), dtype=jnp.float32)


def _vmem_budget_bytes() -> int:
    """~3/4 of physical VMEM (gen-aware: ~48 MiB v7x, ~96 MiB v5e/v6e)."""
    try:
        cap = int(pltpu.get_tpu_info().vmem_capacity_bytes)
    except Exception:
        cap = 64 << 20  # conservative fallback (v7x physical)
    return (cap * 3) // 4


def _vmem_need_bytes(tm: int, tk: int, L: int, x_bytes: int, out_bytes: int) -> int:
    """Approximate VMEM footprint, padded to TPU lane/sublane tiles."""
    l_pad = _round_up(L, 128)
    tm_p = _round_up(tm, 8)
    return (2 * tm_p * _round_up(tk, 128) * x_bytes   # x tile, double-buffered
            + 2 * _round_up(tk, 8) * l_pad * 4        # P tile (f32), double-buffered
            + 2 * tm_p * l_pad * out_bytes            # out tile, double-buffered
            + tm_p * l_pad * 4)                       # f32 accumulator scratch


def _choose_tiles(M, K, L, x_bytes, out_bytes, vmem_budget, k_tile=None):
    # --- TM: enough grid steps for megacore sharding + DMA/compute overlap ---
    if M <= 256:
        tm = M                       # single/partial tile; full dim is always legal
    elif pl.cdiv(M, 512) >= 8:
        tm = 512
    else:
        tm = 256                     # short grid -> smaller tile (v7x has 2 TCs)

    # --- TK: keep all of K in one block when it fits, else tile (mult. of 128) ---
    if k_tile is not None:
        tk = min(K, max(128, (int(k_tile) // 128) * 128))
    else:
        tk = K
        if _vmem_need_bytes(tm, tk, L, x_bytes, out_bytes) > vmem_budget:
            l_pad = _round_up(L, 128)
            tm_p = _round_up(tm, 8)
            fixed = 2 * tm_p * l_pad * out_bytes + tm_p * l_pad * 4
            per_k128 = 2 * tm_p * 128 * x_bytes + 2 * 128 * l_pad * 4
            avail = vmem_budget - fixed
            tk = 128 * max(1, avail // per_k128) if avail > 0 else 128
            if tk >= K:
                tk = K

    # Last resort for tiny budgets: shrink TM (kept a multiple of 8).
    while _vmem_need_bytes(tm, tk, L, x_bytes, out_bytes) > vmem_budget and tm > 8:
        tm = max(8, ((tm // 2) // 8) * 8)

    return tm, tk


def _pyramid_pool_kernel(x_ref, p_ref, o_ref, acc_ref, *, k_total, tk, mask_tail):
    # Grid: (M tiles [parallel], K tiles [arbitrary, innermost]).
    # x_ref: (TM, TK) input tile; p_ref: (TK, L) f32 pooling-matrix tile;
    # o_ref: (TM, L) output tile (resident across K); acc_ref: (TM, L) f32 scratch.
    k = pl.program_id(1)

    @pl.when(k == 0)
    def _():
        acc_ref[...] = jnp.zeros_like(acc_ref)

    x = x_ref[...]
    p = p_ref[...]
    if mask_tail:
        # Ragged last K block: padded block contents are undefined, so zero both
        # operands past the valid K range (cheap VPU work; kernel is HBM-bound).
        valid = k_total - k * tk
        col = lax.broadcasted_iota(jnp.int32, x.shape, 1)
        row = lax.broadcasted_iota(jnp.int32, p.shape, 0)
        x = jnp.where(col < valid, x, jnp.zeros_like(x))
        p = jnp.where(row < valid, p, jnp.zeros_like(p))

    acc_ref[...] += jnp.dot(x, p, preferred_element_type=jnp.float32)

    @pl.when(k == pl.num_programs(1) - 1)
    def _():
        o_ref[...] = acc_ref[...].astype(o_ref.dtype)


def pyramid_pooling(x: jax.Array, sizes=SIZES, out_dtype=None, k_tile=None) -> jax.Array:
    """x: (N, C, H, W) -> (N, C, sum(s*s)); out dtype defaults to x.dtype."""
    n, c, h, w = x.shape
    sizes = tuple(int(s) for s in sizes)
    L = int(sum(s * s for s in sizes))
    K = h * w
    M = n * c
    out_dtype = jnp.dtype(x.dtype if out_dtype is None else out_dtype)
    x_bytes = jnp.dtype(x.dtype).itemsize

    pool_mat = _pool_matrix_on_device(h, w, sizes)     # (K, L) f32
    x_flat = x.reshape(M, K)                           # metadata-only: no HBM pass, no cast

    vmem_budget = _vmem_budget_bytes()
    TM, TK = _choose_tiles(M, K, L, x_bytes, out_dtype.itemsize, vmem_budget, k_tile)
    grid_m = pl.cdiv(M, TM)
    grid_k = pl.cdiv(K, TK)
    mask_tail = (K % TK) != 0

    need = _vmem_need_bytes(TM, TK, L, x_bytes, out_dtype.itemsize)
    vmem_limit = int(min(max((need * 5) // 4, 4 << 20), vmem_budget))

    cost = pl.CostEstimate(
        flops=2 * M * K * L,
        transcendentals=0,
        bytes_accessed=M * K * x_bytes + K * L * 4 + M * L * out_dtype.itemsize,
    )

    kernel = functools.partial(
        _pyramid_pool_kernel, k_total=K, tk=TK, mask_tail=mask_tail
    )

    out = pl.pallas_call(
        kernel,
        out_shape=jax.ShapeDtypeStruct((M, L), out_dtype),
        grid_spec=pltpu.PrefetchScalarGridSpec(
            num_scalar_prefetch=0,
            grid=(grid_m, grid_k),
            in_specs=[
                pl.BlockSpec((TM, TK), lambda i, k: (i, k)),   # x tile, streamed
                pl.BlockSpec((TK, L), lambda i, k: (k, 0)),    # P tile (resident if TK==K)
            ],
            out_specs=pl.BlockSpec((TM, L), lambda i, k: (i, 0)),
            scratch_shapes=[pltpu.VMEM((TM, L), jnp.float32)],
        ),
        compiler_params=pltpu.CompilerParams(
            dimension_semantics=("parallel", "arbitrary"),
            vmem_limit_bytes=vmem_limit,
        ),
        cost_estimate=cost,
    )(x_flat, pool_mat)

    return out.reshape(n, c, L)                         # metadata-only reshape


def _reference(x: jax.Array, sizes=SIZES) -> jax.Array:
    """Pure-JAX f32 reference of the PyTorch forward."""
    n, c, h, w = x.shape
    feats = []
    for s in sizes:
        ph = jnp.asarray(_adaptive_pool_matrix_1d(h, s))  # (H, s)
        pw = jnp.asarray(_adaptive_pool_matrix_1d(w, s))  # (W, s)
        pooled = jnp.einsum("nchw,hi,wj->ncij", x, ph, pw)
        feats.append(pooled.reshape(n, c, s * s))
    return jnp.concatenate(feats, axis=-1)


if __name__ == "__main__":
    key = jax.random.PRNGKey(0)

    # N=2, C=4, H=W=16  ->  output (2, 4, 1+9+36+64) = (2, 4, 110); all-f32 path.
    x = jax.random.normal(key, (2, 4, 16, 16), dtype=jnp.float32)
    out = jax.block_until_ready(pyramid_pooling(x))
    ref = jax.block_until_ready(_reference(x))
    assert out.shape == (2, 4, 110), out.shape
    np.testing.assert_allclose(np.asarray(out), np.asarray(ref), rtol=1e-5, atol=1e-5)

    # Exercise the K-tiled accumulation path (grid_k > 1 with a masked ragged
    # tail) at a small shape by forcing a 128-wide K tile (K = 17*17 = 289).
    x2 = jax.random.normal(jax.random.PRNGKey(1), (2, 4, 17, 17), dtype=jnp.float32)
    out2 = jax.block_until_ready(pyramid_pooling(x2, k_tile=128))
    ref2 = jax.block_until_ready(_reference(x2))
    assert out2.shape == (2, 4, 110), out2.shape
    np.testing.assert_allclose(np.asarray(out2), np.asarray(ref2), rtol=1e-5, atol=1e-5)

    print("KERNEL_OK")
</pallas_src>

<mosaic_0001>
module attributes {stable_mosaic.version = 11 : i64} {
  func.func @_pyramid_pool_kernel(%arg0: i32, %arg1: i32, %arg2: memref<8x256xf32, #tpu.memory_space<vmem>>, %arg3: memref<256x110xf32, #tpu.memory_space<vmem>>, %arg4: memref<8x110xf32, #tpu.memory_space<vmem>>, %arg5: memref<8x110xf32, #tpu.memory_space<vmem>>) attributes {dimension_semantics = [#tpu.dimension_semantics<parallel>, #tpu.dimension_semantics<arbitrary>], iteration_bounds = array<i64: 1, 1>, scalar_prefetch = 0 : i64, scratch_operands = 1 : i64, tpu.core_type = #tpu.core_type<tc>, window_params = [{transform_indices = @transform_0, window_bounds = array<i64: 8, 256>}, {transform_indices = @transform_1, window_bounds = array<i64: 256, 110>}, {transform_indices = @transform_2, window_bounds = array<i64: 8, 110>}]} {
    %c0_i32 = arith.constant 0 : i32
    %0 = arith.cmpi eq, %arg1, %c0_i32 : i32
    %1 = arith.extui %0 : i1 to i32
    %c0_i32_0 = arith.constant 0 : i32
    %2 = arith.cmpi ne, %1, %c0_i32_0 : i32
    scf.if %2 {
      %cst_10 = arith.constant 0.000000e+00 : f32
      %12 = vector.broadcast %cst_10 : f32 to vector<8x110xf32>
      %c0_11 = arith.constant 0 : index
      %c0_12 = arith.constant 0 : index
      %13 = vector.load %arg5[%c0_11, %c0_12] : memref<8x110xf32, #tpu.memory_space<vmem>>, vector<8x110xf32>
      tpu.vector_store %arg5[%c0_11, %c0_12], %12 {strides = array<i32>} : memref<8x110xf32, #tpu.memory_space<vmem>>, vector<8x110xf32>,
    } else {
    }
    %c0 = arith.constant 0 : index
    %c0_1 = arith.constant 0 : index
    %3 = vector.load %arg2[%c0, %c0_1] : memref<8x256xf32, #tpu.memory_space<vmem>>, vector<8x256xf32>
    %c0_2 = arith.constant 0 : index
    %c0_3 = arith.constant 0 : index
    %4 = vector.load %arg3[%c0_2, %c0_3] : memref<256x110xf32, #tpu.memory_space<vmem>>, vector<256x110xf32>
    %c0_4 = arith.constant 0 : index
    %c0_5 = arith.constant 0 : index
    %5 = vector.load %arg5[%c0_4, %c0_5] : memref<8x110xf32, #tpu.memory_space<vmem>>, vector<8x110xf32>
    %cst = arith.constant dense<0.000000e+00> : vector<8x110xf32>
    %6 = tpu.matmul %3, %4, %cst {dimension_numbers = #tpu.dot_dimension_numbers<[1], [0], [0], [1], [0, 0, 1, 1], [], []>} : vector<8x256xf32>, vector<256x110xf32>, vector<8x110xf32> -> vector<8x110xf32>
    %7 = arith.addf %5, %6 : vector<8x110xf32>
    %c0_6 = arith.constant 0 : index
    %c0_7 = arith.constant 0 : index
    %8 = vector.load %arg5[%c0_6, %c0_7] : memref<8x110xf32, #tpu.memory_space<vmem>>, vector<8x110xf32>
    tpu.vector_store %arg5[%c0_6, %c0_7], %7 {strides = array<i32>} : memref<8x110xf32, #tpu.memory_space<vmem>>, vector<8x110xf32>,
    %c0_i32_8 = arith.constant 0 : i32
    %9 = arith.cmpi eq, %arg1, %c0_i32_8 : i32
    %10 = arith.extui %9 : i1 to i32
    %c0_i32_9 = arith.constant 0 : i32
    %11 = arith.cmpi ne, %10, %c0_i32_9 : i32
    scf.if %11 {
      %c0_10 = arith.constant 0 : index
      %c0_11 = arith.constant 0 : index
      %12 = vector.load %arg5[%c0_10, %c0_11] : memref<8x110xf32, #tpu.memory_space<vmem>>, vector<8x110xf32>
      %c0_12 = arith.constant 0 : index
      %c0_13 = arith.constant 0 : index
      %13 = vector.load %arg4[%c0_12, %c0_13] : memref<8x110xf32, #tpu.memory_space<vmem>>, vector<8x110xf32>
      tpu.vector_store %arg4[%c0_12, %c0_13], %12 {strides = array<i32>} : memref<8x110xf32, #tpu.memory_space<vmem>>, vector<8x110xf32>,
    } else {
    }
    return
  }
  func.func @transform_0(%arg0: i32, %arg1: i32) -> (i32, i32) {
    %c0_i32 = arith.constant 0 : i32
    return %arg0, %arg1 : i32, i32
  }
  func.func @transform_1(%arg0: i32, %arg1: i32) -> (i32, i32) {
    %c0_i32 = arith.constant 0 : i32
    %c0_i32_0 = arith.constant 0 : i32
    return %arg1, %c0_i32 : i32, i32
  }
  func.func @transform_2(%arg0: i32, %arg1: i32) -> (i32, i32) {
    %c0_i32 = arith.constant 0 : i32
    %c0_i32_0 = arith.constant 0 : i32
    return %arg0, %c0_i32 : i32, i32
  }
}

</mosaic_0001>

<bundles_post_ra>
// kernel: tpu_custom_call.1
= control target key start
LH: loop header
LB: loop body
LE: loop exit
PB: predicated region body
PF: predicated region fallthrough
CT: control target
= control target key end

     0   :  { %s267_s0 = inlined_call_operand.vmem [shape: f32[8,256], index: 0, kind: input, shape index: {}]   ;;  %s268_s1 = inlined_call_operand.vmem [shape: f32[256,110], index: 1, kind: input, shape index: {}]   ;;  %s269_s2 = inlined_call_operand.hbm [shape: f32[8,110], index: 2, kind: output, shape index: {}]  }
   0x1   :  { %v35_v0 = vld [vmem:[%s268_s1 + $0x78] sm:$0xff]  ;;  %v34_v2 = vld [vmem:[%s268_s1 + $0x70] sm:$0xff]  ;;  %v33_v4 = vld [vmem:[%s268_s1 + $0x68] sm:$0xff] }
   0x2   :  { %v51_v1 = vld [vmem:[%s268_s1 + $0xf8] sm:$0xff]  ;;  %53 = vmatpush.msra.mxu0 %v35_v0  ;;  %v50_v3 = vld [vmem:[%s268_s1 + $0xf0] sm:$0xff]  ;;  %v49_v5 = vld [vmem:[%s268_s1 + $0xe8] sm:$0xff] }
   0x3   :  { %73 = vmatpush.msra.mxu1 %v51_v1  ;;  %v32_v6 = vld [vmem:[%s268_s1 + $0x60] sm:$0xff]  ;;  %v31_v8 = vld [vmem:[%s268_s1 + $0x58] sm:$0xff]  ;;  %v30_v10 = vld [vmem:[%s268_s1 + $0x50] sm:$0xff] }
   0x4   :  { %54 = vmatpush.msra.mxu0 %v34_v2  ;;  %v48_v7 = vld [vmem:[%s268_s1 + $0xe0] sm:$0xff]  ;;  %v47_v9 = vld [vmem:[%s268_s1 + $0xd8] sm:$0xff]  ;;  %v46_v11 = vld [vmem:[%s268_s1 + $0xd0] sm:$0xff] }
   0x5   :  { %74 = vmatpush.msra.mxu1 %v50_v3  ;;  %v29_v12 = vld [vmem:[%s268_s1 + $0x48] sm:$0xff] }
   0x6   :  { %55 = vmatpush.msra.mxu0 %v33_v4  ;;  %v45_v13 = vld [vmem:[%s268_s1 + $0xc8] sm:$0xff] }
   0x7   :  { %75 = vmatpush.msra.mxu1 %v49_v5 }
   0x8   :  { %56 = vmatpush.msra.mxu0 %v32_v6 }
   0x9   :  { %76 = vmatpush.msra.mxu1 %v48_v7 }
   0xa   :  { %57 = vmatpush.msra.mxu0 %v31_v8 }
   0xb   :  { %77 = vmatpush.msra.mxu1 %v47_v9 }
   0xc   :  { %58 = vmatpush.msra.mxu0 %v30_v10 }
   0xd   :  { %78 = vmatpush.msra.mxu1 %v46_v11 }
   0xe   :  { %7 = vsyncpa [#allocation4], 0  ;;  %v28_v14 = vld [vmem:[%s268_s1 + $0x40] sm:$0xff]  ;;  %59 = vmatpush.msra.mxu0 %v29_v12  ;;  %v27_v16 = vld [vmem:[%s268_s1 + $0x38] sm:$0xff]  ;;  %vm16_vm0 = vcmask 900096   ;;  %v145_v34 = vmov 0.0  }
   0xf   :  { %v44_v15 = vld [vmem:[%s268_s1 + $0xc0] sm:$0xff]  ;;  %79 = vmatpush.msra.mxu1 %v45_v13  ;;  %v43_v17 = vld [vmem:[%s268_s1 + $0xb8] sm:$0xff]  ;;  %v26_v18 = vld [vmem:[%s268_s1 + $0x30] sm:$0xff]  ;;  %17 = vst.msk [vmem:[#allocation2] sm:$0xff] %vm16_vm0, %v145_v34  ;;  %s108_s24 = sshll.u32 %s269_s2, 4  ;;  %s109_s24 = int_to_ptr.hbm [resolvable:$true] %s108_s24 }
  0x10   :  { %60 = vmatpush.msra.mxu0 %v28_v14  ;;  %v42_v19 = vld [vmem:[%s268_s1 + $0xb0] sm:$0xff]  ;;  %v25_v20 = vld [vmem:[%s268_s1 + $0x28] sm:$0xff]  ;;  %v24_v22 = vld [vmem:[%s268_s1 + $0x20] sm:$0xff] }
  0x11   :  { %80 = vmatpush.msra.mxu1 %v44_v15  ;;  %v41_v21 = vld [vmem:[%s268_s1 + $0xa8] sm:$0xff]  ;;  %v40_v23 = vld [vmem:[%s268_s1 + $0xa0] sm:$0xff]  ;;  %v23_v24 = vld [vmem:[%s268_s1 + $0x18] sm:$0xff] }
  0x12   :  { %61 = vmatpush.msra.mxu0 %v27_v16  ;;  %v39_v25 = vld [vmem:[%s268_s1 + $0x98] sm:$0xff]  ;;  %v22_v26 = vld [vmem:[%s268_s1 + $0x10] sm:$0xff]  ;;  %v21_v28 = vld [vmem:[%s268_s1 + $0x8] sm:$0xff] }
  0x13   :  { %81 = vmatpush.msra.mxu1 %v43_v17  ;;  %v38_v27 = vld [vmem:[%s268_s1 + $0x90] sm:$0xff]  ;;  %v37_v29 = vld [vmem:[%s268_s1 + $0x88] sm:$0xff]  ;;  %v20_v30 = vld [vmem:[%s268_s1] sm:$0xff] }
  0x14   :  { %62 = vmatpush.msra.mxu0 %v26_v18  ;;  %v36_v31 = vld [vmem:[%s268_s1 + $0x80] sm:$0xff]  ;;  %v19_v33 = vld [vmem:[%s267_s0 + $0x8] sm:$0xff]  ;;  %s146_s1 = smov [#allocation3]  }
  0x15   :  { %82 = vmatpush.msra.mxu1 %v42_v19  ;;  %v18_v32 = vld [vmem:[%s267_s0] sm:$0xff]  ;;  %s106_s21 = sshll.u32 %s146_s1, 4  ;;  %s107_s21 = int_to_ptr.vmem [resolvable:$true] %s106_s21 }
  0x16   :  { %63 = vmatpush.msra.mxu0 %v25_v20  ;;  %v52_v36 = vld [vmem:[#allocation2] sm:$0xff] }
  0x17   :  { %83 = vmatpush.msra.mxu1 %v41_v21 }
  0x18   :  { %64 = vmatpush.msra.mxu0 %v24_v22 }
  0x19   :  { %84 = vmatpush.msra.mxu1 %v40_v23 }
  0x1a   :  { %65 = vmatpush.msra.mxu0 %v23_v24 }
  0x1b   :  { %85 = vmatpush.msra.mxu1 %v39_v25 }
  0x1c   :  { %66 = vmatpush.msra.mxu0 %v22_v26 }
  0x1d   :  { %86 = vmatpush.msra.mxu1 %v38_v27 }
  0x1e   :  { %67 = vmatpush.msra.mxu0 %v21_v28 }
  0x1f   :  { %87 = vmatpush.msra.mxu1 %v37_v29 }
  0x20   :  { %68 = vmatpush.msra.mxu0 %v20_v30 }
  0x21   :  { %88 = vmatpush.msra.mxu1 %v36_v31  ;;  %69 = vmatmul.f32.vlgmr.msra.gmra.mxu0 %v18_v32 }
  0x22   :  { %89 = vmatmul.f32.vlgmr.msra.gmra.mxu1 %v19_v33 }
  0x9e   :  { %v70_v35 = vpop.f32.mrf.mxu0 }
  0x9f   :  { %v90_v37 = vpop.f32.mrf.mxu1 }
  0xa0   :  { %v91_v38 = vadd.f32 %v90_v37, %v70_v35 }
  0xa2   :  { %v93_v39 = vadd.f32 %v91_v38, %v52_v36 }
  0xa4   :  { %95 = vst.msk [vmem:[#allocation2] sm:$0xff] %vm16_vm0, %v93_v39 }
  0xab   :  { %v99_v40 = vld [vmem:[#allocation2] sm:$0xff] }
  0xac   :  { %100 = vst.msk [vmem:[#allocation3] sm:$0xff] %vm16_vm0, %v99_v40 }
  0xad   :  { %111 = dma.vmem_to_hbm [thread:$0]  %s107_s21, 128, %s109_s24, [#allocation4]  }
  0xae   :  { %143 = dma.done.wait [#allocation4], 128  }
  0xaf   :  { %144 = vsyncadd [#allocation4], 4294967168 }
  0xb0   :  { %116 = vsyncpa [#allocation4], 1 }

</bundles_post_ra>
